<compile_context>
chip_gen: v5e
topology: v5e:2x2
jax: 0.10.0
libtpu: 0.0.40
codegen_flags: <defaults>
</compile_context>

<pallas_src>
import functools

import jax
import jax.numpy as jnp
from jax.experimental import pallas as pl
from jax.experimental.pallas import tpu as pltpu

IN_SHAPE = 768
HIDDEN = 256
OUT_SHAPE = 1
NEG_SLOPE = 0.01  # nn.LeakyReLU default
BN_EPS = 1e-5


def _round_up(x, m):
    return (x + m - 1) // m * m


def siamese_kernel(wt_ref, mut_ref, w1_ref, p1_ref, w2_ref, b2_ref, v3_ref,
                   out_ref):
    """Fused shared-weight MLP on both branches + difference.

    p1_ref rows: [0] = layer-1 bias, [1] = BN1 scale, [2] = BN1 shift.
    b2_ref:      [1, H] layer-2 bias.
    v3_ref:      [1, H] = BN2_scale * W3[:, 0] * BN3_scale  (layer-2 BN shift,
                 layer-3 bias and layer-3 BN shift cancel in mut - wt).
    """
    bm = out_ref.shape[0]

    # Shared weights -> stack both branches along M and run each layer once.
    # Concatenate in f32 (8-sublane aligned), then cast to bf16 for the MXU.
    x = jnp.concatenate([mut_ref[...], wt_ref[...]], axis=0)        # [2bm, F]
    x = x.astype(jnp.bfloat16)

    b1 = p1_ref[0:1, :]
    s1 = p1_ref[1:2, :]
    t1 = p1_ref[2:3, :]

    # layer 1: Linear -> LeakyReLU -> BN affine (Dropout = identity in eval)
    h = jnp.dot(x, w1_ref[...], preferred_element_type=jnp.float32) + b1
    h = jnp.where(h > 0, h, NEG_SLOPE * h)
    h = h * s1 + t1

    # layer 2: Linear -> LeakyReLU  (BN2 scale folded into v3; shift cancels)
    h = jnp.dot(h.astype(jnp.bfloat16), w2_ref[...],
                preferred_element_type=jnp.float32) + b2_ref[...]
    h = jnp.where(h > 0, h, NEG_SLOPE * h)

    # difference of the two branches, then the folded N=1 projection as a
    # VPU multiply + lane reduction (keeps the MXU free of a [*,256]@[256,1]).
    d = h[:bm, :] - h[bm:, :]                                       # mut - wt
    out = jnp.sum(d * v3_ref[...], axis=-1, keepdims=True)          # [bm, 1]
    out_ref[...] = out.astype(out_ref.dtype)


def extended_siamese_forward(wt, mut, kparams, *, bm=256):
    """wt, mut: [B, IN_SHAPE] float32 -> ddg: [B, OUT_SHAPE] float32."""
    assert bm % 8 == 0, "batch tile must be a multiple of 8"
    B = wt.shape[0]
    w1, p1, w2, b2, v3 = kparams

    # Clamp the tile to the (8-rounded) batch and pad B to a tile multiple.
    bm_eff = min(bm, _round_up(B, 8))
    B_pad = _round_up(B, bm_eff)
    if B_pad != B:
        pad = ((0, B_pad - B), (0, 0))
        wt = jnp.pad(wt, pad)
        mut = jnp.pad(mut, pad)

    grid = (B_pad // bm_eff,)

    flops = 2 * (2 * B_pad) * (IN_SHAPE * HIDDEN + HIDDEN * HIDDEN) \
        + 2 * B_pad * HIDDEN
    bytes_accessed = (
        2 * B_pad * IN_SHAPE * 4 + B_pad * OUT_SHAPE * 4            # acts
        + (IN_SHAPE * HIDDEN + HIDDEN * HIDDEN) * 2                 # bf16 W
        + (3 * HIDDEN + HIDDEN + HIDDEN) * 4                        # vectors
    )

    weight_spec = lambda shape: pl.BlockSpec(shape, lambda i: (0, 0))

    out = pl.pallas_call(
        siamese_kernel,
        out_shape=jax.ShapeDtypeStruct((B_pad, OUT_SHAPE), jnp.float32),
        grid=grid,
        in_specs=[
            pl.BlockSpec((bm_eff, IN_SHAPE), lambda i: (i, 0)),     # wt tile
            pl.BlockSpec((bm_eff, IN_SHAPE), lambda i: (i, 0)),     # mut tile
            weight_spec((IN_SHAPE, HIDDEN)),                        # W1 (bf16)
            weight_spec((3, HIDDEN)),                               # b1/s1/t1
            weight_spec((HIDDEN, HIDDEN)),                          # W2 (bf16)
            weight_spec((1, HIDDEN)),                               # b2
            weight_spec((1, HIDDEN)),                               # v3
        ],
        out_specs=pl.BlockSpec((bm_eff, OUT_SHAPE), lambda i: (i, 0)),
        compiler_params=pltpu.CompilerParams(
            dimension_semantics=("parallel",),
        ),
        cost_estimate=pl.CostEstimate(
            flops=int(flops),
            transcendentals=0,
            bytes_accessed=int(bytes_accessed),
        ),
    )(wt, mut, w1, p1, w2, b2, v3)

    return out[:B]


# ---------------------------------------------------------------------------
# Parameter construction (torch-like) and folding for the kernel.
# ---------------------------------------------------------------------------
def init_torch_params(key):
    """Deterministic synthetic Linear + BatchNorm1d parameters per block."""
    def make_layer(k, fan_in, fan_out):
        kw, kb, kg, kbe, km, kv = jax.random.split(k, 6)
        bound = 1.0 / jnp.sqrt(fan_in)
        return dict(
            w=jax.random.uniform(kw, (fan_in, fan_out), jnp.float32, -bound, bound),
            b=jax.random.uniform(kb, (fan_out,), jnp.float32, -bound, bound),
            gamma=1.0 + 0.1 * jax.random.normal(kg, (fan_out,), jnp.float32),
            beta=0.1 * jax.random.normal(kbe, (fan_out,), jnp.float32),
            mean=0.1 * jax.random.normal(km, (fan_out,), jnp.float32),
            var=1.0 + 0.1 * jax.random.uniform(kv, (fan_out,), jnp.float32),
        )

    k1, k2, k3 = jax.random.split(key, 3)
    return (make_layer(k1, IN_SHAPE, HIDDEN),
            make_layer(k2, HIDDEN, HIDDEN),
            make_layer(k3, HIDDEN, OUT_SHAPE))


def fold_params(tparams):
    """Fold eval-mode BN + layer-3 linearity into kernel parameters (glue)."""
    def bn_affine(l):
        scale = l["gamma"] / jnp.sqrt(l["var"] + BN_EPS)
        shift = l["beta"] - l["mean"] * scale
        return scale, shift

    l1, l2, l3 = tparams
    s1, t1 = bn_affine(l1)
    s2, _t2 = bn_affine(l2)     # shift cancels in (mut - wt)
    s3, _t3 = bn_affine(l3)     # shift + layer-3 bias cancel in (mut - wt)

    w1 = l1["w"].astype(jnp.bfloat16)
    p1 = jnp.stack([l1["b"], s1, t1], axis=0)                 # [3, H] f32
    w2 = l2["w"].astype(jnp.bfloat16)
    b2 = l2["b"][None, :]                                     # [1, H] f32
    v3 = (s2 * l3["w"][:, 0] * s3[0])[None, :]                # [1, H] f32
    return w1, p1, w2, b2, v3


def reference_forward(wt, mut, tparams):
    """Pure-JAX f32 reference of the eval-mode PyTorch forward."""
    def bn(x, l):
        return (x - l["mean"]) / jnp.sqrt(l["var"] + BN_EPS) * l["gamma"] + l["beta"]

    def branch(x):
        l1, l2, l3 = tparams
        h = x @ l1["w"] + l1["b"]
        h = jnp.where(h > 0, h, NEG_SLOPE * h)
        h = bn(h, l1)
        h = h @ l2["w"] + l2["b"]
        h = jnp.where(h > 0, h, NEG_SLOPE * h)
        h = bn(h, l2)
        o = h @ l3["w"] + l3["b"]
        o = bn(o, l3)
        return o

    return branch(mut) - branch(wt)


if __name__ == "__main__":
    key = jax.random.PRNGKey(0)
    k_params, k_wt, k_mut = jax.random.split(key, 3)

    B = 16  # small batch for the test; kernel clamps the tile and pads as needed
    tparams = init_torch_params(k_params)
    kparams = fold_params(tparams)

    wt = jax.random.normal(k_wt, (B, IN_SHAPE), jnp.float32)
    mut = jax.random.normal(k_mut, (B, IN_SHAPE), jnp.float32)

    fwd = functools.partial(extended_siamese_forward, bm=256)
    ddg = jax.block_until_ready(fwd(wt, mut, kparams))

    ref = reference_forward(wt, mut, tparams)
    assert ddg.shape == (B, OUT_SHAPE), ddg.shape
    max_diff = float(jnp.max(jnp.abs(ddg - ref)))
    # bf16 matmuls with f32 accumulation -> loosened tolerance vs f32 reference
    assert jnp.allclose(ddg, ref, atol=2e-2, rtol=2e-2), max_diff

    print("KERNEL_OK")
</pallas_src>

<mosaic_0001>
module attributes {stable_mosaic.version = 11 : i64} {
  func.func @siamese_kernel(%arg0: i32, %arg1: memref<16x768xf32, #tpu.memory_space<vmem>>, %arg2: memref<16x768xf32, #tpu.memory_space<vmem>>, %arg3: memref<768x256xbf16, #tpu.memory_space<vmem>>, %arg4: memref<3x256xf32, #tpu.memory_space<vmem>>, %arg5: memref<256x256xbf16, #tpu.memory_space<vmem>>, %arg6: memref<1x256xf32, #tpu.memory_space<vmem>>, %arg7: memref<1x256xf32, #tpu.memory_space<vmem>>, %arg8: memref<16x1xf32, #tpu.memory_space<vmem>>) attributes {dimension_semantics = [#tpu.dimension_semantics<parallel>], iteration_bounds = array<i64: 1>, scalar_prefetch = 0 : i64, scratch_operands = 0 : i64, tpu.core_type = #tpu.core_type<tc>, window_params = [{transform_indices = @transform_0, window_bounds = array<i64: 16, 768>}, {transform_indices = @transform_1, window_bounds = array<i64: 16, 768>}, {pipeline_mode = #tpu.pipeline_mode<synchronous>, transform_indices = @transform_2, window_bounds = array<i64: 768, 256>}, {pipeline_mode = #tpu.pipeline_mode<synchronous>, transform_indices = @transform_3, window_bounds = array<i64: 3, 256>}, {pipeline_mode = #tpu.pipeline_mode<synchronous>, transform_indices = @transform_4, window_bounds = array<i64: 256, 256>}, {pipeline_mode = #tpu.pipeline_mode<synchronous>, transform_indices = @transform_5, window_bounds = array<i64: 1, 256>}, {pipeline_mode = #tpu.pipeline_mode<synchronous>, transform_indices = @transform_6, window_bounds = array<i64: 1, 256>}, {transform_indices = @transform_7, window_bounds = array<i64: 16, 1>}]} {
    %c0 = arith.constant 0 : index
    %c0_0 = arith.constant 0 : index
    %0 = vector.load %arg2[%c0, %c0_0] : memref<16x768xf32, #tpu.memory_space<vmem>>, vector<16x768xf32>
    %c0_1 = arith.constant 0 : index
    %c0_2 = arith.constant 0 : index
    %1 = vector.load %arg1[%c0_1, %c0_2] : memref<16x768xf32, #tpu.memory_space<vmem>>, vector<16x768xf32>
    %2 = tpu.concatenate %0, %1 in 0 : vector<16x768xf32>, vector<16x768xf32> -> vector<32x768xf32>
    %3 = arith.truncf %2 : vector<32x768xf32> to vector<32x768xbf16>
    %c0_3 = arith.constant 0 : index
    %c0_4 = arith.constant 0 : index
    %4 = vector.load %arg4[%c0_3, %c0_4] : memref<3x256xf32, #tpu.memory_space<vmem>>, vector<1x256xf32>
    %c1 = arith.constant 1 : index
    %c0_5 = arith.constant 0 : index
    %5 = vector.load %arg4[%c1, %c0_5] : memref<3x256xf32, #tpu.memory_space<vmem>>, vector<1x256xf32>
    %c2 = arith.constant 2 : index
    %c0_6 = arith.constant 0 : index
    %6 = vector.load %arg4[%c2, %c0_6] : memref<3x256xf32, #tpu.memory_space<vmem>>, vector<1x256xf32>
    %c0_7 = arith.constant 0 : index
    %c0_8 = arith.constant 0 : index
    %7 = vector.load %arg3[%c0_7, %c0_8] : memref<768x256xbf16, #tpu.memory_space<vmem>>, vector<768x256xbf16>
    %cst = arith.constant dense<0.000000e+00> : vector<32x256xf32>
    %8 = tpu.matmul %3, %7, %cst {dimension_numbers = #tpu.dot_dimension_numbers<[1], [0], [0], [1], [0, 0, 1, 1], [], []>} : vector<32x768xbf16>, vector<768x256xbf16>, vector<32x256xf32> -> vector<32x256xf32>
    %9 = vector.broadcast %4 : vector<1x256xf32> to vector<32x256xf32>
    %10 = arith.addf %8, %9 : vector<32x256xf32>
    %cst_9 = arith.constant 0.000000e+00 : f32
    %11 = vector.broadcast %cst_9 : f32 to vector<32x256xf32>
    %12 = arith.cmpf ogt, %10, %11 : vector<32x256xf32>
    %cst_10 = arith.constant 0.00999999977 : f32
    %13 = vector.broadcast %cst_10 : f32 to vector<32x256xf32>
    %14 = arith.mulf %13, %10 : vector<32x256xf32>
    %15 = arith.select %12, %10, %14 : vector<32x256xi1>, vector<32x256xf32>
    %16 = vector.broadcast %5 : vector<1x256xf32> to vector<32x256xf32>
    %17 = arith.mulf %15, %16 : vector<32x256xf32>
    %18 = vector.broadcast %6 : vector<1x256xf32> to vector<32x256xf32>
    %19 = arith.addf %17, %18 : vector<32x256xf32>
    %20 = arith.truncf %19 : vector<32x256xf32> to vector<32x256xbf16>
    %c0_11 = arith.constant 0 : index
    %c0_12 = arith.constant 0 : index
    %21 = vector.load %arg5[%c0_11, %c0_12] : memref<256x256xbf16, #tpu.memory_space<vmem>>, vector<256x256xbf16>
    %cst_13 = arith.constant dense<0.000000e+00> : vector<32x256xf32>
    %22 = tpu.matmul %20, %21, %cst_13 {dimension_numbers = #tpu.dot_dimension_numbers<[1], [0], [0], [1], [0, 0, 1, 1], [], []>} : vector<32x256xbf16>, vector<256x256xbf16>, vector<32x256xf32> -> vector<32x256xf32>
    %c0_14 = arith.constant 0 : index
    %c0_15 = arith.constant 0 : index
    %23 = vector.load %arg6[%c0_14, %c0_15] : memref<1x256xf32, #tpu.memory_space<vmem>>, vector<1x256xf32>
    %24 = vector.broadcast %23 : vector<1x256xf32> to vector<32x256xf32>
    %25 = arith.addf %22, %24 : vector<32x256xf32>
    %cst_16 = arith.constant 0.000000e+00 : f32
    %26 = vector.broadcast %cst_16 : f32 to vector<32x256xf32>
    %27 = arith.cmpf ogt, %25, %26 : vector<32x256xf32>
    %cst_17 = arith.constant 0.00999999977 : f32
    %28 = vector.broadcast %cst_17 : f32 to vector<32x256xf32>
    %29 = arith.mulf %28, %25 : vector<32x256xf32>
    %30 = arith.select %27, %25, %29 : vector<32x256xi1>, vector<32x256xf32>
    %31 = vector.extract_strided_slice %30 {offsets = [0, 0], sizes = [16, 256], strides = [1, 1]} : vector<32x256xf32> to vector<16x256xf32>
    %32 = vector.extract_strided_slice %30 {offsets = [16, 0], sizes = [16, 256], strides = [1, 1]} : vector<32x256xf32> to vector<16x256xf32>
    %33 = arith.subf %31, %32 : vector<16x256xf32>
    %c0_18 = arith.constant 0 : index
    %c0_19 = arith.constant 0 : index
    %34 = vector.load %arg7[%c0_18, %c0_19] : memref<1x256xf32, #tpu.memory_space<vmem>>, vector<1x256xf32>
    %35 = vector.broadcast %34 : vector<1x256xf32> to vector<16x256xf32>
    %36 = arith.mulf %33, %35 : vector<16x256xf32>
    %cst_20 = arith.constant dense<0.000000e+00> : vector<16xf32>
    %37 = vector.multi_reduction <add>, %36, %cst_20 [1] : vector<16x256xf32> to vector<16xf32>
    %38 = vector.shape_cast %37 : vector<16xf32> to vector<16x1xf32>
    %c0_21 = arith.constant 0 : index
    %c0_22 = arith.constant 0 : index
    %39 = vector.load %arg8[%c0_21, %c0_22] : memref<16x1xf32, #tpu.memory_space<vmem>>, vector<16x1xf32>
    tpu.vector_store %arg8[%c0_21, %c0_22], %38 {strides = array<i32>} : memref<16x1xf32, #tpu.memory_space<vmem>>, vector<16x1xf32>,
    return
  }
  func.func @transform_0(%arg0: i32) -> (i32, i32) {
    %c0_i32 = arith.constant 0 : i32
    %c0_i32_0 = arith.constant 0 : i32
    return %arg0, %c0_i32 : i32, i32
  }
  func.func @transform_1(%arg0: i32) -> (i32, i32) {
    %c0_i32 = arith.constant 0 : i32
    %c0_i32_0 = arith.constant 0 : i32
    return %arg0, %c0_i32 : i32, i32
  }
  func.func @transform_2(%arg0: i32) -> (i32, i32) {
    %c0_i32 = arith.constant 0 : i32
    %c0_i32_0 = arith.constant 0 : i32
    %c0_i32_1 = arith.constant 0 : i32
    return %c0_i32, %c0_i32_0 : i32, i32
  }
  func.func @transform_3(%arg0: i32) -> (i32, i32) {
    %c0_i32 = arith.constant 0 : i32
    %c0_i32_0 = arith.constant 0 : i32
    %c0_i32_1 = arith.constant 0 : i32
    return %c0_i32, %c0_i32_0 : i32, i32
  }
  func.func @transform_4(%arg0: i32) -> (i32, i32) {
    %c0_i32 = arith.constant 0 : i32
    %c0_i32_0 = arith.constant 0 : i32
    %c0_i32_1 = arith.constant 0 : i32
    return %c0_i32, %c0_i32_0 : i32, i32
  }
  func.func @transform_5(%arg0: i32) -> (i32, i32) {
    %c0_i32 = arith.constant 0 : i32
    %c0_i32_0 = arith.constant 0 : i32
    %c0_i32_1 = arith.constant 0 : i32
    return %c0_i32, %c0_i32_0 : i32, i32
  }
  func.func @transform_6(%arg0: i32) -> (i32, i32) {
    %c0_i32 = arith.constant 0 : i32
    %c0_i32_0 = arith.constant 0 : i32
    %c0_i32_1 = arith.constant 0 : i32
    return %c0_i32, %c0_i32_0 : i32, i32
  }
  func.func @transform_7(%arg0: i32) -> (i32, i32) {
    %c0_i32 = arith.constant 0 : i32
    %c0_i32_0 = arith.constant 0 : i32
    return %arg0, %c0_i32 : i32, i32
  }
}

</mosaic_0001>

<bundles_post_ra>
// kernel: tpu_custom_call.1
= control target key start
LH: loop header
LB: loop body
LE: loop exit
PB: predicated region body
PF: predicated region fallthrough
CT: control target
= control target key end

     0   :  { %12 = vsyncpa [#allocation3], 0  ;;  %s2282_s0 = inlined_call_operand.hbm [shape: f32[16,768], index: 0, kind: input, shape index: {}]   ;;  %s2283_s1 = inlined_call_operand.hbm [shape: f32[16,768], index: 1, kind: input, shape index: {}]   ;;  %s2284_s2 = inlined_call_operand.hbm [shape: bf16[768,256], index: 2, kind: input, shape index: {}]   ;;  %s2285_s3 = inlined_call_operand.hbm [shape: f32[3,256], index: 3, kind: input, shape index: {}]   ;;  %s2286_s4 = inlined_call_operand.hbm [shape: bf16[256,256], index: 4, kind: input, shape index: {}]   ;;  %s2287_s5 = inlined_call_operand.vmem [shape: f32[1,256], index: 5, kind: input, shape index: {}]   ;;  %s2288_s6 = inlined_call_operand.vmem [shape: f32[1,256], index: 6, kind: input, shape index: {}]   ;;  %s2289_s7 = inlined_call_operand.vmem [shape: f32[16,1], index: 7, kind: output, shape index: {}]  }
   0x1   :  { %13 = vsyncpa [#allocation5], 0 }
   0x2   :  { %14 = vsyncpa [#allocation8], 0  ;;  %s32_s26 = sshll.u32 %s2283_s1, 4  ;;  %s2109_s27 = smov [#allocation4]   ;;  %s33_s26 = int_to_ptr.hbm [resolvable:$true] %s32_s26 }
   0x3   :  { %s34_s28 = sshll.u32 %s2109_s27, 4  ;;  %s59_s8 = sshll.u32 %s2285_s3, 4  ;;  %s35_s28 = int_to_ptr.vmem [resolvable:$true] %s34_s28  ;;  %s60_s8 = int_to_ptr.hbm [resolvable:$true] %s59_s8 }
   0x4   :  { %s2110_s9 = smov 768   ;;  %s2111_s10 = smov 48  }
   0x5   :  { %40 = dma.hbm_to_vmem [thread:$0]  %s33_s26, 1536, %s35_s28, [#allocation5], %s2110_s9, %s2110_s9, %s2111_s10  }
   0x6   :  { %s2112_s11 = smov [#allocation7]   ;;  %s19_s15 = sshll.u32 %s2282_s0, 4  ;;  %s20_s15 = int_to_ptr.hbm [resolvable:$true] %s19_s15 }
   0x7   :  { %s61_s12 = sshll.u32 %s2112_s11, 4  ;;  %s45_s17 = sshll.u32 %s2284_s2, 4  ;;  %s62_s12 = int_to_ptr.vmem [resolvable:$true] %s61_s12  ;;  %s46_s17 = int_to_ptr.hbm [resolvable:$true] %s45_s17 }
   0x8   :  { %64 = dma.hbm_to_vmem [thread:$0]  %s60_s8, 128, %s62_s12, [#allocation8]  }
   0x9   :  { %s2113_s18 = smov [#allocation2]   ;;  %s2114_s3 = smov [#allocation6]  }
   0xa   :  { %s21_s19 = sshll.u32 %s2113_s18, 4  ;;  %s47_s20 = sshll.u32 %s2114_s3, 4  ;;  %s22_s19 = int_to_ptr.vmem [resolvable:$true] %s21_s19  ;;  %s48_s20 = int_to_ptr.vmem [resolvable:$true] %s47_s20 }
   0xb   :  { %27 = dma.hbm_to_vmem [thread:$0]  %s20_s15, 1536, %s22_s19, [#allocation3], %s2110_s9, %s2110_s9, %s2111_s10  }
   0xc   :  { %s2115_s21 = smov 128   ;;  %s2116_s22 = smov 8  }
   0xd   :  { %53 = dma.hbm_to_vmem [thread:$0]  %s46_s17, 12288, %s48_s20, [#allocation5], %s2115_s21, %s2115_s21, %s2116_s22  }
   0xe   :  { %s69_s24 = sshll.u32 %s2286_s4, 4  ;;  %s2117_s25 = smov [#allocation9]   ;;  %s70_s24 = int_to_ptr.hbm [resolvable:$true] %s69_s24 }
   0xf   :  { %s71_s26 = sshll.u32 %s2117_s25, 4  ;;  %s72_s26 = int_to_ptr.vmem [resolvable:$true] %s71_s26 }
  0x10   :  { %77 = dma.hbm_to_vmem [thread:$0]  %s70_s24, 4096, %s72_s26, [#allocation8], %s2115_s21, %s2115_s21, %s2116_s22  }
  0x11   :  { %2103 = dma.done.wait [#allocation3], 1536  }
  0x12   :  { %2104 = vsyncadd [#allocation3], 4294965760 }
  0x13   :  { %2105 = dma.done.wait [#allocation5], 13824  }
  0x14   :  { %2106 = vsyncadd [#allocation5], 4294953472 }
  0x15   :  { %2107 = dma.done.wait [#allocation8], 4224  }
  0x16   :  { %2108 = vsyncadd [#allocation8], 4294963072  ;;  %v1392_v0 = vld [vmem:[#allocation6 + $0x70] sm:$0xf]  ;;  %v1861_v1 = vld [vmem:[#allocation6 + $0x74] sm:$0xf0] }
  0x17   :  { %v1456_v2 = vld [vmem:[#allocation6 + $0xf0] sm:$0xf]  ;;  %v1393_v3 = vor.u32 %v1861_v1, %v1392_v0  ;;  %v1877_v4 = vld [vmem:[#allocation6 + $0xf4] sm:$0xf0]  ;;  %v1384_v11 = vld [vmem:[#allocation6 + $0x60] sm:$0xf] }
  0x18   :  { %v1520_v5 = vld [vmem:[#allocation6 + $0x170] sm:$0xf]  ;;  %v1893_v6 = vld [vmem:[#allocation6 + $0x174] sm:$0xf0]  ;;  %v1457_v7 = vor.u32 %v1877_v4, %v1456_v2  ;;  %v1859_v13 = vld [vmem:[#allocation6 + $0x64] sm:$0xf0] }
  0x19   :  { %v1521_v8 = vor.u32 %v1893_v6, %v1520_v5  ;;  %v1584_v9 = vld [vmem:[#allocation6 + $0x1f0] sm:$0xf]  ;;  %v1909_v10 = vld [vmem:[#allocation6 + $0x1f4] sm:$0xf0]  ;;  %724 = vmatpush.bf16.msra.mxu0 %v1393_v3  ;;  %v1448_v14 = vld [vmem:[#allocation6 + $0xe0] sm:$0xf]  ;;  %v1385_v16 = vor.u32 %v1859_v13, %v1384_v11 }
  0x1a   :  { %v1585_v12 = vor.u32 %v1909_v10, %v1584_v9  ;;  %v1875_v15 = vld [vmem:[#allocation6 + $0xe4] sm:$0xf0]  ;;  %743 = vmatpush.bf16.msra.mxu1 %v1457_v7  ;;  %v1512_v18 = vld [vmem:[#allocation6 + $0x160] sm:$0xf]  ;;  %v1376_v23 = vld [vmem:[#allocation6 + $0x50] sm:$0xf] }
  0x1b   :  { %762 = vmatpush.bf16.msra.mxu2 %v1521_v8  ;;  %v1449_v17 = vor.u32 %v1875_v15, %v1448_v14  ;;  %v1891_v19 = vld [vmem:[#allocation6 + $0x164] sm:$0xf0]  ;;  %v1576_v20 = vld [vmem:[#allocation6 + $0x1e0] sm:$0xf]  ;;  %v1857_v24 = vld [vmem:[#allocation6 + $0x54] sm:$0xf0] }
  0x1c   :  { %781 = vmatpush.bf16.msra.mxu3 %v1585_v12  ;;  %v1513_v21 = vor.u32 %v1891_v19, %v1512_v18  ;;  %v1907_v22 = vld [vmem:[#allocation6 + $0x1e4] sm:$0xf0]  ;;  %v1440_v26 = vld [vmem:[#allocation6 + $0xd0] sm:$0xf]  ;;  %v1873_v27 = vld [vmem:[#allocation6 + $0xd4] sm:$0xf0]  ;;  %v1377_v29 = vor.u32 %v1857_v24, %v1376_v23 }
  0x1d   :  { %v1577_v25 = vor.u32 %v1907_v22, %v1576_v20  ;;  %v1504_v28 = vld [vmem:[#allocation6 + $0x150] sm:$0xf]  ;;  %725 = vmatpush.bf16.msra.mxu0 %v1385_v16  ;;  %v1889_v30 = vld [vmem:[#allocation6 + $0x154] sm:$0xf0]  ;;  %v1441_v33 = vor.u32 %v1873_v27, %v1440_v26  ;;  %v1368_v35 = vld [vmem:[#allocation6 + $0x40] sm:$0xf] }
  0x1e   :  { %v1568_v31 = vld [vmem:[#allocation6 + $0x1d0] sm:$0xf]  ;;  %v1905_v32 = vld [vmem:[#allocation6 + $0x1d4] sm:$0xf0]  ;;  %744 = vmatpush.bf16.msra.mxu1 %v1449_v17  ;;  %v1505_v34 = vor.u32 %v1889_v30, %v1504_v28  ;;  %v1855_v36 = vld [vmem:[#allocation6 + $0x44] sm:$0xf0] }
  0x1f   :  { %763 = vmatpush.bf16.msra.mxu2 %v1513_v21  ;;  %v1432_v37 = vld [vmem:[#allocation6 + $0xc0] sm:$0xf]  ;;  %v1569_v38 = vor.u32 %v1905_v32, %v1568_v31  ;;  %v1871_v39 = vld [vmem:[#allocation6 + $0xc4] sm:$0xf0]  ;;  %v1369_v44 = vor.u32 %v1855_v36, %v1368_v35  ;;  %v1360_v47 = vld [vmem:[#allocation6 + $0x30] sm:$0xf] }
  0x20   :  { %782 = vmatpush.bf16.msra.mxu3 %v1577_v25  ;;  %v1496_v40 = vld [vmem:[#allocation6 + $0x140] sm:$0xf]  ;;  %v1887_v41 = vld [vmem:[#allocation6 + $0x144] sm:$0xf0]  ;;  %v1433_v45 = vor.u32 %v1871_v39, %v1432_v37  ;;  %v1853_v48 = vld [vmem:[#allocation6 + $0x34] sm:$0xf0] }
  0x21   :  { %v1560_v42 = vld [vmem:[#allocation6 + $0x1c0] sm:$0xf]  ;;  %v1903_v43 = vld [vmem:[#allocation6 + $0x1c4] sm:$0xf0]  ;;  %726 = vmatpush.bf16.msra.mxu0 %v1377_v29  ;;  %v1497_v46 = vor.u32 %v1887_v41, %v1496_v40  ;;  %v1424_v49 = vld [vmem:[#allocation6 + $0xb0] sm:$0xf]  ;;  %v1361_v56 = vor.u32 %v1853_v48, %v1360_v47 }
  0x22   :  { %745 = vmatpush.bf16.msra.mxu1 %v1441_v33  ;;  %v1561_v50 = vor.u32 %v1903_v43, %v1560_v42  ;;  %v1869_v51 = vld [vmem:[#allocation6 + $0xb4] sm:$0xf0]  ;;  %v1488_v52 = vld [vmem:[#allocation6 + $0x130] sm:$0xf]  ;;  %v1352_v59 = vld [vmem:[#allocation6 + $0x20] sm:$0xf] }
  0x23   :  { %764 = vmatpush.bf16.msra.mxu2 %v1505_v34  ;;  %v1885_v53 = vld [vmem:[#allocation6 + $0x134] sm:$0xf0]  ;;  %v1552_v54 = vld [vmem:[#allocation6 + $0x1b0] sm:$0xf]  ;;  %v1425_v57 = vor.u32 %v1869_v51, %v1424_v49  ;;  %v1851_v60 = vld [vmem:[#allocation6 + $0x24] sm:$0xf0] }
  0x24   :  { %783 = vmatpush.bf16.msra.mxu3 %v1569_v38  ;;  %v1901_v55 = vld [vmem:[#allocation6 + $0x1b4] sm:$0xf0]  ;;  %v1489_v58 = vor.u32 %v1885_v53, %v1488_v52  ;;  %v1416_v61 = vld [vmem:[#allocation6 + $0xa0] sm:$0xf]  ;;  %v1867_v63 = vld [vmem:[#allocation6 + $0xa4] sm:$0xf0]  ;;  %v1353_v4 = vor.u32 %v1851_v60, %v1352_v59 }
  0x25   :  { %727 = vmatpush.bf16.msra.mxu0 %v1369_v44  ;;  %v1553_v62 = vor.u32 %v1901_v55, %v1552_v54  ;;  %v1480_v0 = vld [vmem:[#allocation6 + $0x120] sm:$0xf]  ;;  %v1883_v1 = vld [vmem:[#allocation6 + $0x124] sm:$0xf0]  ;;  %v1417_v5 = vor.u32 %v1867_v63, %v1416_v61  ;;  %v1344_v7 = vld [vmem:[#allocation6 + $0x10] sm:$0xf] }
  0x26   :  { %746 = vmatpush.bf16.msra.mxu1 %v1433_v45  ;;  %v1544_v2 = vld [vmem:[#allocation6 + $0x1a0] sm:$0xf]  ;;  %v1899_v3 = vld [vmem:[#allocation6 + $0x1a4] sm:$0xf0]  ;;  %v1481_v6 = vor.u32 %v1883_v1, %v1480_v0  ;;  %v1849_v8 = vld [vmem:[#allocation6 + $0x14] sm:$0xf0] }
  0x27   :  { %765 = vmatpush.bf16.msra.mxu2 %v1497_v46  ;;  %v1408_v9 = vld [vmem:[#allocation6 + $0x90] sm:$0xf]  ;;  %v1545_v10 = vor.u32 %v1899_v3, %v1544_v2  ;;  %v1865_v11 = vld [vmem:[#allocation6 + $0x94] sm:$0xf0]  ;;  %v1336_v16 = vld [vmem:[#allocation6] sm:$0xf]  ;;  %v1345_v17 = vor.u32 %v1849_v8, %v1344_v7 }
  0x28   :  { %784 = vmatpush.bf16.msra.mxu3 %v1561_v50  ;;  %v1472_v12 = vld [vmem:[#allocation6 + $0x110] sm:$0xf]  ;;  %v1881_v13 = vld [vmem:[#allocation6 + $0x114] sm:$0xf0]  ;;  %v1847_v18 = vld [vmem:[#allocation6 + $0x4] sm:$0xf0]  ;;  %v1409_v21 = vor.u32 %v1865_v11, %v1408_v9 }
  0x29   :  { %728 = vmatpush.bf16.msra.mxu0 %v1361_v56  ;;  %v1536_v14 = vld [vmem:[#allocation6 + $0x190] sm:$0xf]  ;;  %v1897_v15 = vld [vmem:[#allocation6 + $0x194] sm:$0xf0]  ;;  %v1400_v19 = vld [vmem:[#allocation6 + $0x80] sm:$0xf]  ;;  %v1473_v22 = vor.u32 %v1881_v13, %v1472_v12  ;;  %v1337_v34 = vor.u32 %v1847_v18, %v1336_v16 }
  0x2a   :  { %747 = vmatpush.bf16.msra.mxu1 %v1425_v57  ;;  %v1863_v20 = vld [vmem:[#allocation6 + $0x84] sm:$0xf0]  ;;  %v1464_v23 = vld [vmem:[#allocation6 + $0x100] sm:$0xf]  ;;  %v1537_v26 = vor.u32 %v1897_v15, %v1536_v14  ;;  %v108_v29 = vld [vmem:[#allocation4 + $0x30] sm:$0xff] }
  0x2b   :  { %766 = vmatpush.bf16.msra.mxu2 %v1489_v58  ;;  %v1879_v24 = vld [vmem:[#allocation6 + $0x104] sm:$0xf0]  ;;  %v1528_v25 = vld [vmem:[#allocation6 + $0x180] sm:$0xf]  ;;  %v109_v31 = vld [vmem:[#allocation4 + $0x38] sm:$0xff]  ;;  %v1401_v38 = vor.u32 %v1863_v20, %v1400_v19 }
  0x2c   :  { %785 = vmatpush.bf16.msra.mxu3 %v1553_v62  ;;  %v1895_v27 = vld [vmem:[#allocation6 + $0x184] sm:$0xf0]  ;;  %v102_v28 = vld [vmem:[#allocation4] sm:$0xff]  ;;  %v1860_v32 = vld [vmem:[#allocation6 + $0x74] sm:$0xf]  ;;  %v1465_v39 = vor.u32 %v1879_v24, %v1464_v23 }
  0x2d   :  { %729 = vmatpush.bf16.msra.mxu0 %v1353_v4  ;;  %v103_v30 = vld [vmem:[#allocation4 + $0x8] sm:$0xff]  ;;  %v1394_v33 = vld [vmem:[#allocation6 + $0x78] sm:$0xf0]  ;;  %v104_v35 = vld [vmem:[#allocation4 + $0x10] sm:$0xff]  ;;  %v1529_v43 = vor.u32 %v1895_v27, %v1528_v25  ;;  %v2173_v48 = vpack.c.bf16 %v108_v29, %v102_v28 }
  0x2e   :  { %748 = vmatpush.bf16.msra.mxu1 %v1417_v5  ;;  %v1712_v36 = vld [vmem:[#allocation6 + $0x2f0] sm:$0xf]  ;;  %v1941_v37 = vld [vmem:[#allocation6 + $0x2f4] sm:$0xf0]  ;;  %v110_v40 = vld [vmem:[#allocation4 + $0x40] sm:$0xff]  ;;  %v1397_v44 = vor.u32 %v1860_v32, %v1394_v33  ;;  %v2175_v53 = vpack.c.bf16 %v109_v31, %v103_v30 }
  0x2f   :  { %767 = vmatpush.bf16.msra.mxu2 %v1481_v6  ;;  %v105_v41 = vld [vmem:[#allocation4 + $0x18] sm:$0xff]  ;;  %v111_v42 = vld [vmem:[#allocation4 + $0x48] sm:$0xff]  ;;  %v1648_v45 = vld [vmem:[#allocation6 + $0x270] sm:$0xf]  ;;  %v1713_v49 = vor.u32 %v1941_v37, %v1712_v36  ;;  %v2177_v54 = vpack.c.bf16 %v110_v40, %v104_v35 }
  0x30   :  { %786 = vmatpush.bf16.msra.mxu3 %v1545_v10  ;;  %v1925_v46 = vld [vmem:[#allocation6 + $0x274] sm:$0xf0]  ;;  %v1876_v47 = vld [vmem:[#allocation6 + $0xf4] sm:$0xf]  ;;  %v1458_v50 = vld [vmem:[#allocation6 + $0xf8] sm:$0xf0]  ;;  %v2179_v57 = vpack.c.bf16 %v111_v42, %v105_v41 }
  0x31   :  { %730 = vmatpush.bf16.msra.mxu0 %v1345_v17  ;;  %v1858_v51 = vld [vmem:[#allocation6 + $0x64] sm:$0xf]  ;;  %v1386_v52 = vld [vmem:[#allocation6 + $0x68] sm:$0xf0]  ;;  %v1704_v55 = vld [vmem:[#allocation6 + $0x2e0] sm:$0xf]  ;;  %v1649_v58 = vor.u32 %v1925_v46, %v1648_v45  ;;  %v1461_v59 = vor.u32 %v1876_v47, %v1458_v50 }
  0x32   :  { %749 = vmatpush.bf16.msra.mxu1 %v1409_v21  ;;  %v1939_v56 = vld [vmem:[#allocation6 + $0x2e4] sm:$0xf0]  ;;  %v1389_v60 = vor.u32 %v1858_v51, %v1386_v52  ;;  %v1640_v61 = vld [vmem:[#allocation6 + $0x260] sm:$0xf]  ;;  %v1874_v63 = vld [vmem:[#allocation6 + $0xe4] sm:$0xf] }
  0x33   :  { %768 = vmatpush.bf16.msra.mxu2 %v1473_v22  ;;  %v1923_v62 = vld [vmem:[#allocation6 + $0x264] sm:$0xf0]  ;;  %v1705_v0 = vor.u32 %v1939_v56, %v1704_v55  ;;  %v1450_v1 = vld [vmem:[#allocation6 + $0xe8] sm:$0xf0]  ;;  %v1856_v2 = vld [vmem:[#allocation6 + $0x54] sm:$0xf] }
  0x34   :  { %787 = vmatpush.bf16.msra.mxu3 %v1537_v26  ;;  %v1378_v3 = vld [vmem:[#allocation6 + $0x58] sm:$0xf0]  ;;  %v1696_v4 = vld [vmem:[#allocation6 + $0x2d0] sm:$0xf]  ;;  %v1937_v5 = vld [vmem:[#allocation6 + $0x2d4] sm:$0xf0]  ;;  %v1641_v6 = vor.u32 %v1923_v62, %v1640_v61  ;;  %v1453_v7 = vor.u32 %v1874_v63, %v1450_v1 }
  0x35   :  { %731 = vmatpush.bf16.msra.mxu0 %v1337_v34  ;;  %v1381_v8 = vor.u32 %v1856_v2, %v1378_v3  ;;  %v1632_v9 = vld [vmem:[#allocation6 + $0x250] sm:$0xf]  ;;  %v1921_v10 = vld [vmem:[#allocation6 + $0x254] sm:$0xf0]  ;;  %v1872_v11 = vld [vmem:[#allocation6 + $0xd4] sm:$0xf]  ;;  %v1697_v12 = vor.u32 %v1937_v5, %v1696_v4 }
  0x36   :  { %750 = vmatpush.bf16.msra.mxu1 %v1401_v38  ;;  %v1442_v13 = vld [vmem:[#allocation6 + $0xd8] sm:$0xf0]  ;;  %v1854_v14 = vld [vmem:[#allocation6 + $0x44] sm:$0xf]  ;;  %v1370_v15 = vld [vmem:[#allocation6 + $0x48] sm:$0xf0]  ;;  %v1633_v18 = vor.u32 %v1921_v10, %v1632_v9 }
  0x37   :  { %769 = vmatpush.bf16.msra.mxu2 %v1465_v39  ;;  %v1688_v16 = vld [vmem:[#allocation6 + $0x2c0] sm:$0xf]  ;;  %v1935_v17 = vld [vmem:[#allocation6 + $0x2c4] sm:$0xf0]  ;;  %v1870_v21 = vld [vmem:[#allocation6 + $0xc4] sm:$0xf]  ;;  %v1445_v22 = vor.u32 %v1872_v11, %v1442_v13  ;;  %v1373_v23 = vor.u32 %v1854_v14, %v1370_v15 }
  0x38   :  { %788 = vmatpush.bf16.msra.mxu3 %v1529_v43  ;;  %732 = vmatmul.bf16.vlgmr.msra.gmra.mxu0 %v2173_v48  ;;  %v1624_v19 = vld [vmem:[#allocation6 + $0x240] sm:$0xf]  ;;  %v1919_v20 = vld [vmem:[#allocation6 + $0x244] sm:$0xf0]  ;;  %v1434_v24 = vld [vmem:[#allocation6 + $0xc8] sm:$0xf0]  ;;  %v1689_v27 = vor.u32 %v1935_v17, %v1688_v16 }
  0x39   :  { %751 = vmatmul.bf16.vlgmr.msra.gmra.mxu1 %v2175_v53  ;;  %800 = vmatpush.bf16.msrb.mxu0 %v1649_v58  ;;  %v114_v25 = vld [vmem:[#allocation2] sm:$0xff]  ;;  %v120_v26 = vld [vmem:[#allocation2 + $0x30] sm:$0xff]  ;;  %v115_v28 = vld [vmem:[#allocation2 + $0x8] sm:$0xff]  ;;  %v1625_v35 = vor.u32 %v1919_v20, %v1624_v19  ;;  %v1437_v39 = vor.u32 %v1870_v21, %v1434_v24 }
  0x3a   :  { %819 = vmatpush.bf16.msrb.mxu1 %v1713_v49  ;;  %770 = vmatmul.bf16.vlgmr.msra.gmra.mxu2 %v2177_v54  ;;  %v121_v29 = vld [vmem:[#allocation2 + $0x38] sm:$0xff]  ;;  %v1852_v30 = vld [vmem:[#allocation6 + $0x34] sm:$0xf]  ;;  %v1680_v33 = vld [vmem:[#allocation6 + $0x2b0] sm:$0xf] }
  0x3b   :  { %838 = vmatpush.bf16.msrb.mxu2 %v1397_v44  ;;  %789 = vmatmul.bf16.vlgmr.msra.gmra.mxu3 %v2179_v57  ;;  %v1362_v31 = vld [vmem:[#allocation6 + $0x38] sm:$0xf0]  ;;  %v116_v32 = vld [vmem:[#allocation2 + $0x10] sm:$0xff]  ;;  %v1933_v34 = vld [vmem:[#allocation6 + $0x2b4] sm:$0xf0]  ;;  %v2185_v44 = vpack.c.bf16 %v120_v26, %v114_v25  ;;  %v2187_v50 = vpack.c.bf16 %v121_v29, %v115_v28 }
  0x3c   :  { %857 = vmatpush.bf16.msrb.mxu3 %v1461_v59  ;;  %v122_v36 = vld [vmem:[#allocation2 + $0x40] sm:$0xff]  ;;  %v117_v37 = vld [vmem:[#allocation2 + $0x18] sm:$0xff]  ;;  %v123_v38 = vld [vmem:[#allocation2 + $0x48] sm:$0xff]  ;;  %v1365_v40 = vor.u32 %v1852_v30, %v1362_v31  ;;  %v1681_v45 = vor.u32 %v1933_v34, %v1680_v33 }
  0x3d   :  { %801 = vmatpush.bf16.msrb.mxu0 %v1641_v6  ;;  %v1616_v41 = vld [vmem:[#allocation6 + $0x230] sm:$0xf]  ;;  %v1917_v42 = vld [vmem:[#allocation6 + $0x234] sm:$0xf0]  ;;  %v1868_v43 = vld [vmem:[#allocation6 + $0xb4] sm:$0xf]  ;;  %v2189_v51 = vpack.c.bf16 %v122_v36, %v116_v32  ;;  %v2191_v56 = vpack.c.bf16 %v123_v38, %v117_v37 }
  0x3e   :  { %820 = vmatpush.bf16.msrb.mxu1 %v1705_v0  ;;  %v1426_v46 = vld [vmem:[#allocation6 + $0xb8] sm:$0xf0]  ;;  %v1850_v47 = vld [vmem:[#allocation6 + $0x24] sm:$0xf]  ;;  %v1354_v49 = vld [vmem:[#allocation6 + $0x28] sm:$0xf0]  ;;  %v1617_v58 = vor.u32 %v1917_v42, %v1616_v41 }
  0x3f   :  { %839 = vmatpush.bf16.msrb.mxu2 %v1389_v60  ;;  %v1672_v52 = vld [vmem:[#allocation6 + $0x2a0] sm:$0xf]  ;;  %v1931_v55 = vld [vmem:[#allocation6 + $0x2a4] sm:$0xf0]  ;;  %v1429_v59 = vor.u32 %v1868_v43, %v1426_v46  ;;  %v1357_v60 = vor.u32 %v1850_v47, %v1354_v49  ;;  %v1866_v63 = vld [vmem:[#allocation6 + $0xa4] sm:$0xf] }
  0x40   :  { %858 = vmatpush.bf16.msrb.mxu3 %v1453_v7  ;;  %v1608_v61 = vld [vmem:[#allocation6 + $0x220] sm:$0xf]  ;;  %v1915_v62 = vld [vmem:[#allocation6 + $0x224] sm:$0xf0]  ;;  %v1673_v0 = vor.u32 %v1931_v55, %v1672_v52  ;;  %v1418_v1 = vld [vmem:[#allocation6 + $0xa8] sm:$0xf0] }
  0x41   :  { %802 = vmatpush.bf16.msrb.mxu0 %v1633_v18  ;;  %v1848_v2 = vld [vmem:[#allocation6 + $0x14] sm:$0xf]  ;;  %v1346_v3 = vld [vmem:[#allocation6 + $0x18] sm:$0xf0]  ;;  %v1664_v4 = vld [vmem:[#allocation6 + $0x290] sm:$0xf]  ;;  %v1609_v6 = vor.u32 %v1915_v62, %v1608_v61 }
  0x42   :  { %821 = vmatpush.bf16.msrb.mxu1 %v1697_v12  ;;  %v1929_v5 = vld [vmem:[#allocation6 + $0x294] sm:$0xf0]  ;;  %v1600_v7 = vld [vmem:[#allocation6 + $0x210] sm:$0xf]  ;;  %v1349_v9 = vor.u32 %v1848_v2, %v1346_v3  ;;  %v1864_v11 = vld [vmem:[#allocation6 + $0x94] sm:$0xf] }
  0x43   :  { %840 = vmatpush.bf16.msrb.mxu2 %v1381_v8  ;;  %v1421_v8 = vor.u32 %v1866_v63, %v1418_v1  ;;  %v1913_v10 = vld [vmem:[#allocation6 + $0x214] sm:$0xf0]  ;;  %v1410_v12 = vld [vmem:[#allocation6 + $0x98] sm:$0xf0]  ;;  %v1665_v13 = vor.u32 %v1929_v5, %v1664_v4  ;;  %v1846_v14 = vld [vmem:[#allocation6 + $0x4] sm:$0xf] }
  0x44   :  { %859 = vmatpush.bf16.msrb.mxu3 %v1445_v22  ;;  %v1338_v15 = vld [vmem:[#allocation6 + $0x8] sm:$0xf0]  ;;  %v1656_v16 = vld [vmem:[#allocation6 + $0x280] sm:$0xf]  ;;  %v1927_v17 = vld [vmem:[#allocation6 + $0x284] sm:$0xf0]  ;;  %v1601_v20 = vor.u32 %v1913_v10, %v1600_v7  ;;  %v1413_v24 = vor.u32 %v1864_v11, %v1410_v12 }
  0x45   :  { %803 = vmatpush.bf16.msrb.mxu0 %v1625_v35  ;;  %v1924_v18 = vld [vmem:[#allocation6 + $0x274] sm:$0xf]  ;;  %v1650_v19 = vld [vmem:[#allocation6 + $0x278] sm:$0xf0]  ;;  %v1592_v21 = vld [vmem:[#allocation6 + $0x200] sm:$0xf]  ;;  %v1341_v25 = vor.u32 %v1846_v14, %v1338_v15  ;;  %v1657_v29 = vor.u32 %v1927_v17, %v1656_v16 }
  0x46   :  { %822 = vmatpush.bf16.msrb.mxu1 %v1689_v27  ;;  %v1908_v22 = vld [vmem:[#allocation6 + $0x1f4] sm:$0xf]  ;;  %v1911_v26 = vld [vmem:[#allocation6 + $0x204] sm:$0xf0]  ;;  %v1862_v27 = vld [vmem:[#allocation6 + $0x84] sm:$0xf]  ;;  %v1653_v31 = vor.u32 %v1924_v18, %v1650_v19 }
  0x47   :  { %841 = vmatpush.bf16.msrb.mxu2 %v1373_v23  ;;  %v1586_v23 = vld [vmem:[#allocation6 + $0x1f8] sm:$0xf0]  ;;  %v1402_v28 = vld [vmem:[#allocation6 + $0x88] sm:$0xf0]  ;;  %v106_v30 = vld [vmem:[#allocation4 + $0x20] sm:$0xff] }
  0x48   :  { %860 = vmatpush.bf16.msrb.mxu3 %v1437_v39  ;;  %737 = vmatmul.bf16.gmra.mxu0 %v2185_v44  ;;  %v1892_v32 = vld [vmem:[#allocation6 + $0x174] sm:$0xf]  ;;  %v1522_v33 = vld [vmem:[#allocation6 + $0x178] sm:$0xf0]  ;;  %v1589_v35 = vor.u32 %v1908_v22, %v1586_v23  ;;  %v1922_v37 = vld [vmem:[#allocation6 + $0x264] sm:$0xf]  ;;  %v1593_v39 = vor.u32 %v1911_v26, %v1592_v21  ;;  %v1405_v43 = vor.u32 %v1862_v27, %v1402_v28 }
  0x49   :  { %756 = vmatmul.bf16.gmra.mxu1 %v2187_v50  ;;  %804 = vmatpush.bf16.msrb.mxu0 %v1617_v58  ;;  %v1940_v34 = vld [vmem:[#allocation6 + $0x2f4] sm:$0xf]  ;;  %v1714_v36 = vld [vmem:[#allocation6 + $0x2f8] sm:$0xf0]  ;;  %v1642_v38 = vld [vmem:[#allocation6 + $0x268] sm:$0xf0] }
  0x4a   :  { %823 = vmatpush.bf16.msrb.mxu1 %v1681_v45  ;;  %775 = vmatmul.bf16.gmra.mxu2 %v2189_v51  ;;  %v107_v41 = vld [vmem:[#allocation4 + $0x28] sm:$0xff]  ;;  %v113_v42 = vld [vmem:[#allocation4 + $0x58] sm:$0xff]  ;;  %v1525_v45 = vor.u32 %v1892_v32, %v1522_v33  ;;  %v1890_v46 = vld [vmem:[#allocation6 + $0x164] sm:$0xf]  ;;  %v1717_v49 = vor.u32 %v1940_v34, %v1714_v36  ;;  %v1645_v52 = vor.u32 %v1922_v37, %v1642_v38 }
  0x4b   :  { %842 = vmatpush.bf16.msrb.mxu2 %v1365_v40  ;;  %794 = vmatmul.bf16.gmra.mxu3 %v2191_v56  ;;  %v112_v40 = vld [vmem:[#allocation4 + $0x50] sm:$0xff]  ;;  %v1514_v47 = vld [vmem:[#allocation6 + $0x168] sm:$0xf0]  ;;  %v1906_v55 = vld [vmem:[#allocation6 + $0x1e4] sm:$0xf]  ;;  %v2199_v61 = vpack.c.bf16 %v113_v42, %v107_v41 }
  0x4c   :  { %861 = vmatpush.bf16.msrb.mxu3 %v1429_v59  ;;  %v1578_v58 = vld [vmem:[#allocation6 + $0x1e8] sm:$0xf0]  ;;  %v1938_v59 = vld [vmem:[#allocation6 + $0x2e4] sm:$0xf]  ;;  %v1920_v63 = vld [vmem:[#allocation6 + $0x254] sm:$0xf]  ;;  %v1517_v1 = vor.u32 %v1890_v46, %v1514_v47 }
  0x4d   :  { %805 = vmatpush.bf16.msrb.mxu0 %v1609_v6  ;;  %v1706_v62 = vld [vmem:[#allocation6 + $0x2e8] sm:$0xf0]  ;;  %v1581_v2 = vor.u32 %v1906_v55, %v1578_v58  ;;  %v1888_v3 = vld [vmem:[#allocation6 + $0x154] sm:$0xf]  ;;  %v1506_v4 = vld [vmem:[#allocation6 + $0x158] sm:$0xf0] }
  0x4e   :  { %824 = vmatpush.bf16.msrb.mxu1 %v1673_v0  ;;  %v1634_v0 = vld [vmem:[#allocation6 + $0x258] sm:$0xf0]  ;;  %v1709_v5 = vor.u32 %v1938_v59, %v1706_v62  ;;  %v1904_v7 = vld [vmem:[#allocation6 + $0x1d4] sm:$0xf]  ;;  %v1918_v11 = vld [vmem:[#allocation6 + $0x244] sm:$0xf] }
  0x4f   :  { %843 = vmatpush.bf16.msrb.mxu2 %v1357_v60  ;;  %v2197_v60 = vpack.c.bf16 %v112_v40, %v106_v30  ;;  %v1637_v6 = vor.u32 %v1920_v63, %v1634_v0  ;;  %v1698_v10 = vld [vmem:[#allocation6 + $0x2d8] sm:$0xf0]  ;;  %v1626_v12 = vld [vmem:[#allocation6 + $0x248] sm:$0xf0]  ;;  %v1886_v15 = vld [vmem:[#allocation6 + $0x144] sm:$0xf] }
  0x50   :  { %862 = vmatpush.bf16.msrb.mxu3 %v1421_v8  ;;  %v1570_v8 = vld [vmem:[#allocation6 + $0x1d8] sm:$0xf0]  ;;  %v1498_v16 = vld [vmem:[#allocation6 + $0x148] sm:$0xf0]  ;;  %v1629_v18 = vor.u32 %v1918_v11, %v1626_v12  ;;  %v1902_v19 = vld [vmem:[#allocation6 + $0x1c4] sm:$0xf] }
  0x51   :  { %806 = vmatpush.bf16.msrb.mxu0 %v1601_v20  ;;  %v1573_v14 = vor.u32 %v1904_v7, %v1570_v8  ;;  %v1562_v20 = vld [vmem:[#allocation6 + $0x1c8] sm:$0xf0]  ;;  %v1934_v21 = vld [vmem:[#allocation6 + $0x2c4] sm:$0xf]  ;;  %v1916_v23 = vld [vmem:[#allocation6 + $0x234] sm:$0xf] }
  0x52   :  { %825 = vmatpush.bf16.msrb.mxu1 %v1665_v13  ;;  %v1509_v13 = vor.u32 %v1888_v3, %v1506_v4  ;;  %v1690_v22 = vld [vmem:[#allocation6 + $0x2c8] sm:$0xf0]  ;;  %v1490_v26 = vld [vmem:[#allocation6 + $0x138] sm:$0xf0]  ;;  %v118_v28 = vld [vmem:[#allocation2 + $0x20] sm:$0xff] }
  0x53   :  { %844 = vmatpush.bf16.msrb.mxu2 %v1349_v9  ;;  %v1936_v9 = vld [vmem:[#allocation6 + $0x2d4] sm:$0xf]  ;;  %v1693_v27 = vor.u32 %v1934_v21, %v1690_v22  ;;  %v1682_v33 = vld [vmem:[#allocation6 + $0x2b8] sm:$0xf0]  ;;  %v1914_v34 = vld [vmem:[#allocation6 + $0x224] sm:$0xf] }
  0x54   :  { %863 = vmatpush.bf16.msrb.mxu3 %v1413_v24  ;;  %v1701_v17 = vor.u32 %v1936_v9, %v1698_v10  ;;  %v1618_v24 = vld [vmem:[#allocation6 + $0x238] sm:$0xf0]  ;;  %v1900_v30 = vld [vmem:[#allocation6 + $0x1b4] sm:$0xf]  ;;  %v119_v37 = vld [vmem:[#allocation2 + $0x28] sm:$0xff] }
  0x55   :  { %807 = vmatpush.bf16.msrb.mxu0 %v1593_v39  ;;  %v1932_v32 = vld [vmem:[#allocation6 + $0x2b4] sm:$0xf]  ;;  %v125_v38 = vld [vmem:[#allocation2 + $0x58] sm:$0xff]  ;;  %v1882_v41 = vld [vmem:[#allocation6 + $0x124] sm:$0xf] }
  0x56   :  { %826 = vmatpush.bf16.msrb.mxu1 %v1657_v29  ;;  %v1621_v29 = vor.u32 %v1916_v23, %v1618_v24  ;;  %v124_v36 = vld [vmem:[#allocation2 + $0x50] sm:$0xff]  ;;  %v1482_v42 = vld [vmem:[#allocation6 + $0x128] sm:$0xf0]  ;;  %v1898_v46 = vld [vmem:[#allocation6 + $0x1a4] sm:$0xf]  ;;  %v137_v55 = vpack.c.bf16 %v125_v38, %v119_v37 }
  0x57   :  { %845 = vmatpush.bf16.msrb.mxu2 %v1341_v25  ;;  %v1884_v25 = vld [vmem:[#allocation6 + $0x134] sm:$0xf]  ;;  %v1546_v47 = vld [vmem:[#allocation6 + $0x1a8] sm:$0xf0]  ;;  %v1602_v62 = vld [vmem:[#allocation6 + $0x218] sm:$0xf0]  ;;  %v1485_v63 = vor.u32 %v1882_v41, %v1482_v42 }
  0x58   :  { %864 = vmatpush.bf16.msrb.mxu3 %v1405_v43  ;;  %808 = vmatmul.bf16.vlgmr.msrb.gmra.mxu0 %v2197_v60  ;;  %v1493_v39 = vor.u32 %v1884_v25, %v1490_v26  ;;  %v1685_v43 = vor.u32 %v1932_v32, %v1682_v33  ;;  %v1674_v58 = vld [vmem:[#allocation6 + $0x2a8] sm:$0xf0]  ;;  %v1912_v59 = vld [vmem:[#allocation6 + $0x214] sm:$0xf]  ;;  %v1549_v0 = vor.u32 %v1898_v46, %v1546_v47  ;;  %v1666_v8 = vld [vmem:[#allocation6 + $0x298] sm:$0xf0] }
  0x59   :  { %876 = vmatpush.bf16.msra.mxu0 %v1525_v45  ;;  %827 = vmatmul.bf16.vlgmr.msrb.gmra.mxu1 %v2199_v61  ;;  %v1605_v4 = vor.u32 %v1912_v59, %v1602_v62  ;;  %v1928_v7 = vld [vmem:[#allocation6 + $0x294] sm:$0xf]  ;;  %v1910_v9 = vld [vmem:[#allocation6 + $0x204] sm:$0xf]  ;;  %v1594_v10 = vld [vmem:[#allocation6 + $0x208] sm:$0xf0] }
  0x5a   :  { %895 = vmatpush.bf16.msra.mxu1 %v1589_v35  ;;  %846 = vmatmul.bf16.vlgmr.msrb.gmra.mxu2 %v2173_v48  ;;  %v1501_v48 = vor.u32 %v1886_v15, %v1498_v16  ;;  %v1610_v35 = vld [vmem:[#allocation6 + $0x228] sm:$0xf0]  ;;  %v1597_v15 = vor.u32 %v1910_v9, %v1594_v10  ;;  %v1776_v22 = vld [vmem:[#allocation9 + $0x70] sm:$0xf]  ;;  %v1957_v23 = vld [vmem:[#allocation9 + $0x74] sm:$0xf0] }
  0x5b   :  { %914 = vmatpush.bf16.msra.mxu2 %v1653_v31  ;;  %865 = vmatmul.bf16.vlgmr.msrb.gmra.mxu3 %v2175_v53  ;;  %v1565_v53 = vor.u32 %v1902_v19, %v1562_v20  ;;  %v1554_v31 = vld [vmem:[#allocation6 + $0x1b8] sm:$0xf0]  ;;  %v1613_v45 = vor.u32 %v1914_v34, %v1610_v35  ;;  %v1466_v16 = vld [vmem:[#allocation6 + $0x108] sm:$0xf0]  ;;  %v1926_v19 = vld [vmem:[#allocation6 + $0x284] sm:$0xf] }
  0x5c   :  { %933 = vmatpush.bf16.msra.mxu3 %v1717_v49  ;;  %v1557_v40 = vor.u32 %v1900_v30, %v1554_v31  ;;  %v1930_v49 = vld [vmem:[#allocation6 + $0x2a4] sm:$0xf]  ;;  %v1658_v20 = vld [vmem:[#allocation6 + $0x288] sm:$0xf0]  ;;  %v1956_v24 = vld [vmem:[#allocation9 + $0x74] sm:$0xf] }
  0x5d   :  { %877 = vmatpush.bf16.msra.mxu0 %v1517_v1  ;;  %v1880_v1 = vld [vmem:[#allocation6 + $0x114] sm:$0xf]  ;;  %v1677_v3 = vor.u32 %v1930_v49, %v1674_v58  ;;  %v1954_v26 = vld [vmem:[#allocation9 + $0x64] sm:$0xf]  ;;  %v1762_v30 = vld [vmem:[#allocation9 + $0x58] sm:$0xf0] }
  0x5e   :  { %896 = vmatpush.bf16.msra.mxu1 %v1581_v2  ;;  %v1474_v2 = vld [vmem:[#allocation6 + $0x118] sm:$0xf0]  ;;  %v1752_v34 = vld [vmem:[#allocation9 + $0x40] sm:$0xf]  ;;  %v1951_v35 = vld [vmem:[#allocation9 + $0x44] sm:$0xf0] }
  0x5f   :  { %915 = vmatpush.bf16.msra.mxu2 %v1645_v52  ;;  %v136_v52 = vpack.c.bf16 %v124_v36, %v118_v28  ;;  %v1477_v11 = vor.u32 %v1880_v1, %v1474_v2  ;;  %v1952_v28 = vld [vmem:[#allocation9 + $0x54] sm:$0xf]  ;;  %v1950_v36 = vld [vmem:[#allocation9 + $0x44] sm:$0xf]  ;;  %v1753_v37 = vor.u32 %v1951_v35, %v1752_v34  ;;  %v1754_v38 = vld [vmem:[#allocation9 + $0x48] sm:$0xf0] }
  0x60   :  { %934 = vmatpush.bf16.msra.mxu3 %v1709_v5  ;;  %v1896_v5 = vld [vmem:[#allocation6 + $0x194] sm:$0xf]  ;;  %v1765_v32 = vor.u32 %v1952_v28, %v1762_v30  ;;  %v1949_v41 = vld [vmem:[#allocation9 + $0x34] sm:$0xf0]  ;;  %v1948_v42 = vld [vmem:[#allocation9 + $0x34] sm:$0xf] }
  0x61   :  { %878 = vmatpush.bf16.msra.mxu0 %v1509_v13  ;;  %v1878_v13 = vld [vmem:[#allocation6 + $0x104] sm:$0xf]  ;;  %v1736_v58 = vld [vmem:[#allocation9 + $0x20] sm:$0xf]  ;;  %v1947_v59 = vld [vmem:[#allocation9 + $0x24] sm:$0xf0] }
  0x62   :  { %897 = vmatpush.bf16.msra.mxu1 %v1573_v14  ;;  %v1669_v14 = vor.u32 %v1928_v7, %v1666_v8  ;;  %v1469_v21 = vor.u32 %v1878_v13, %v1466_v16  ;;  %v1746_v46 = vld [vmem:[#allocation9 + $0x38] sm:$0xf0]  ;;  %v1946_v62 = vld [vmem:[#allocation9 + $0x24] sm:$0xf]  ;;  %v1834_v28 = vld [vmem:[#allocation9 + $0xe8] sm:$0xf0] }
  0x63   :  { %916 = vmatpush.bf16.msra.mxu2 %v1637_v6  ;;  %v1538_v6 = vld [vmem:[#allocation6 + $0x198] sm:$0xf0]  ;;  %v2213_v2 = vld [vmem:[#allocation7] ss:$4 sm:$0x3] }
  0x64   :  { %935 = vmatpush.bf16.msra.mxu3 %v1701_v17  ;;  %v1541_v12 = vor.u32 %v1896_v5, %v1538_v6  ;;  %v1894_v17 = vld [vmem:[#allocation6 + $0x184] sm:$0xf]  ;;  %v1944_v5 = vld [vmem:[#allocation9 + $0x14] sm:$0xf]  ;;  %v2216_v9 = vperm.slane %v2213_v2, 0 }
  0x65   :  { %879 = vmatpush.bf16.msra.mxu0 %v1501_v48  ;;  %v1777_v48 = vor.u32 %v1957_v23, %v1776_v22  ;;  %v1730_v8 = vld [vmem:[#allocation9 + $0x18] sm:$0xf0]  ;;  %v1942_v16 = vld [vmem:[#allocation9 + $0x4] sm:$0xf] }
  0x66   :  { %898 = vmatpush.bf16.msra.mxu1 %v1565_v53  ;;  %v1778_v53 = vld [vmem:[#allocation9 + $0x78] sm:$0xf0] }
  0x67   :  { %917 = vmatpush.bf16.msra.mxu2 %v1629_v18  ;;  %v1530_v18 = vld [vmem:[#allocation6 + $0x188] sm:$0xf0]  ;;  %v1781_v25 = vor.u32 %v1956_v24, %v1778_v53  ;;  %v1842_v53 = vld [vmem:[#allocation9 + $0xf8] sm:$0xf0] }
  0x68   :  { %936 = vmatpush.bf16.msra.mxu3 %v1693_v27  ;;  %813 = vmatmul.bf16.gmra.mxu0 %v136_v52  ;;  %v1770_v27 = vld [vmem:[#allocation9 + $0x68] sm:$0xf0] }
  0x69   :  { %880 = vmatpush.bf16.msra.mxu0 %v1493_v39  ;;  %832 = vmatmul.bf16.gmra.mxu1 %v137_v55  ;;  %v1757_v39 = vor.u32 %v1950_v36, %v1754_v38 }
  0x6a   :  { %899 = vmatpush.bf16.msra.mxu1 %v1557_v40  ;;  %851 = vmatmul.bf16.gmra.mxu2 %v2185_v44  ;;  %v1533_v44 = vor.u32 %v1894_v17, %v1530_v18  ;;  %v1744_v40 = vld [vmem:[#allocation9 + $0x30] sm:$0xf]  ;;  %v1722_v18 = vld [vmem:[#allocation9 + $0x8] sm:$0xf0] }
  0x6b   :  { %918 = vmatpush.bf16.msra.mxu2 %v1621_v29  ;;  %870 = vmatmul.bf16.gmra.mxu3 %v2187_v50  ;;  %v1661_v50 = vor.u32 %v1926_v19, %v1658_v20  ;;  %v1725_v20 = vor.u32 %v1942_v16, %v1722_v18  ;;  %v1808_v16 = vld [vmem:[#allocation9 + $0xb0] sm:$0xf]  ;;  %v1965_v18 = vld [vmem:[#allocation9 + $0xb4] sm:$0xf0] }
  0x6c   :  { %937 = vmatpush.bf16.msra.mxu3 %v1685_v43 }
  0x6d   :  { %881 = vmatpush.bf16.msra.mxu0 %v1485_v63  ;;  %v1737_v63 = vor.u32 %v1947_v59, %v1736_v58 }
  0x6e   :  { %900 = vmatpush.bf16.msra.mxu1 %v1549_v0  ;;  %v1738_v0 = vld [vmem:[#allocation9 + $0x28] sm:$0xf0] }
  0x6f   :  { %919 = vmatpush.bf16.msra.mxu2 %v1613_v45  ;;  %v1745_v45 = vor.u32 %v1949_v41, %v1744_v40  ;;  %v1741_v1 = vor.u32 %v1946_v62, %v1738_v0  ;;  %v1968_v40 = vld [vmem:[#allocation9 + $0xd4] sm:$0xf]  ;;  %v1826_v41 = vld [vmem:[#allocation9 + $0xd8] sm:$0xf0]  ;;  %v1966_v62 = vld [vmem:[#allocation9 + $0xc4] sm:$0xf] }
  0x70   :  { %938 = vmatpush.bf16.msra.mxu3 %v1677_v3  ;;  %v1728_v3 = vld [vmem:[#allocation9 + $0x10] sm:$0xf]  ;;  %v1816_v0 = vld [vmem:[#allocation9 + $0xc0] sm:$0xf] }
  0x71   :  { %882 = vmatpush.bf16.msra.mxu0 %v1477_v11 }
  0x72   :  { %901 = vmatpush.bf16.msra.mxu1 %v1541_v12  ;;  %v1733_v12 = vor.u32 %v1944_v5, %v1730_v8  ;;  %v1967_v5 = vld [vmem:[#allocation9 + $0xc4] sm:$0xf0]  ;;  %v2237_v8 = vld [vmem:[#allocation7 + $0x2] ss:$4 sm:$0x3] }
  0x73   :  { %920 = vmatpush.bf16.msra.mxu2 %v1605_v4  ;;  %v1945_v4 = vld [vmem:[#allocation9 + $0x14] sm:$0xf0] }
  0x74   :  { %939 = vmatpush.bf16.msra.mxu3 %v1669_v14  ;;  %v1729_v7 = vor.u32 %v1945_v4, %v1728_v3  ;;  %v1720_v14 = vld [vmem:[#allocation9] sm:$0xf] }
  0x75   :  { %883 = vmatpush.bf16.msra.mxu0 %v1469_v21 }
  0x76   :  { %902 = vmatpush.bf16.msra.mxu1 %v1533_v44 }
  0x77   :  { %921 = vmatpush.bf16.msra.mxu2 %v1597_v15  ;;  %v1943_v15 = vld [vmem:[#allocation9 + $0x4] sm:$0xf0] }
  0x78   :  { %940 = vmatpush.bf16.msra.mxu3 %v1661_v50  ;;  %884 = vmatmul.bf16.vlgmr.msra.gmra.mxu0 %v2177_v54  ;;  %v1768_v54 = vld [vmem:[#allocation9 + $0x60] sm:$0xf]  ;;  %v1721_v17 = vor.u32 %v1943_v15, %v1720_v14  ;;  %v1964_v14 = vld [vmem:[#allocation9 + $0xb4] sm:$0xf]  ;;  %v1810_v15 = vld [vmem:[#allocation9 + $0xb8] sm:$0xf0] }
  0x79   :  { %903 = vmatmul.bf16.vlgmr.msra.gmra.mxu1 %v2179_v57  ;;  %1204 = vmatpush.bf16.msrb.mxu0 %v1777_v48  ;;  %v1955_v57 = vld [vmem:[#allocation9 + $0x64] sm:$0xf0]  ;;  %v1972_v48 = vld [vmem:[#allocation9 + $0xf4] sm:$0xf] }
  0x7a   :  { %922 = vmatmul.bf16.vlgmr.msra.gmra.mxu2 %v2197_v60  ;;  %v1769_v60 = vor.u32 %v1955_v57, %v1768_v54  ;;  %v1845_v54 = vor.u32 %v1972_v48, %v1842_v53  ;;  %v1973_v57 = vld [vmem:[#allocation9 + $0xf4] sm:$0xf0]  ;;  %v2246_v48 = vperm.slane %v2237_v8, 0 }
  0x7b   :  { %941 = vmatmul.bf16.vlgmr.msra.gmra.mxu3 %v2199_v61  ;;  %1242 = vmatpush.bf16.msrb.mxu2 %v1781_v25  ;;  %v1773_v61 = vor.u32 %v1954_v26, %v1770_v27  ;;  %v1840_v25 = vld [vmem:[#allocation9 + $0xf0] sm:$0xf] }
  0x7c   :  { %1261 = vmatpush.bf16.msrb.mxu3 %v1845_v54 }
  0x7d   :  { %1205 = vmatpush.bf16.msrb.mxu0 %v1769_v60  ;;  %v1841_v60 = vor.u32 %v1973_v57, %v1840_v25  ;;  %v1962_v57 = vld [vmem:[#allocation9 + $0xa4] sm:$0xf] }
  0x7f   :  { %1243 = vmatpush.bf16.msrb.mxu2 %v1773_v61  ;;  %1223 = vmatpush.bf16.msrb.mxu1 %v1841_v60 }
  0x83   :  { %1244 = vmatpush.bf16.msrb.mxu2 %v1765_v32 }
  0x87   :  { %1245 = vmatpush.bf16.msrb.mxu2 %v1757_v39 }
  0x88   :  { %889 = vmatmul.bf16.gmra.mxu0 %v2189_v51  ;;  %v1760_v51 = vld [vmem:[#allocation9 + $0x50] sm:$0xf] }
  0x89   :  { %908 = vmatmul.bf16.gmra.mxu1 %v2191_v56  ;;  %v1953_v56 = vld [vmem:[#allocation9 + $0x54] sm:$0xf0] }
  0x8a   :  { %927 = vmatmul.bf16.gmra.mxu2 %v136_v52  ;;  %v1761_v29 = vor.u32 %v1953_v56, %v1760_v51  ;;  %v1749_v52 = vor.u32 %v1948_v42, %v1746_v46  ;;  %v1970_v56 = vld [vmem:[#allocation9 + $0xe4] sm:$0xf]  ;;  %v1824_v42 = vld [vmem:[#allocation9 + $0xd0] sm:$0xf] }
  0x8b   :  { %946 = vmatmul.bf16.gmra.mxu3 %v137_v55  ;;  %v1837_v32 = vor.u32 %v1970_v56, %v1834_v28  ;;  %v1800_v56 = vld [vmem:[#allocation9 + $0xa0] sm:$0xf]  ;;  %v1963_v28 = vld [vmem:[#allocation9 + $0xa4] sm:$0xf0] }
  0x8c   :  { %1206 = vmatpush.bf16.msrb.mxu0 %v1761_v29  ;;  %1246 = vmatpush.bf16.msrb.mxu2 %v1749_v52  ;;  %v1832_v29 = vld [vmem:[#allocation9 + $0xe0] sm:$0xf] }
  0x8d   :  { %1262 = vmatpush.bf16.msrb.mxu3 %v1837_v32 }
  0x90   :  { %1207 = vmatpush.bf16.msrb.mxu0 %v1753_v37  ;;  %1247 = vmatpush.bf16.msrb.mxu2 %v1741_v1 }
  0x94   :  { %1208 = vmatpush.bf16.msrb.mxu0 %v1745_v45  ;;  %1248 = vmatpush.bf16.msrb.mxu2 %v1733_v12  ;;  %v1969_v45 = vld [vmem:[#allocation9 + $0xd4] sm:$0xf0] }
  0x95   :  { %v1825_v46 = vor.u32 %v1969_v45, %v1824_v42 }
  0x98   :  { %1209 = vmatpush.bf16.msrb.mxu0 %v1737_v63  ;;  %1249 = vmatpush.bf16.msrb.mxu2 %v1725_v20  ;;  %v1818_v63 = vld [vmem:[#allocation9 + $0xc8] sm:$0xf0] }
  0x99   :  { %v1821_v4 = vor.u32 %v1966_v62, %v1818_v63 }
  0x9c   :  { %1210 = vmatpush.bf16.msrb.mxu0 %v1729_v7  ;;  %v1817_v7 = vor.u32 %v1967_v5, %v1816_v0  ;;  %v1959_v0 = vld [vmem:[#allocation9 + $0x84] sm:$0xf0] }
  0xa0   :  { %1211 = vmatpush.bf16.msrb.mxu0 %v1721_v17  ;;  %v1813_v17 = vor.u32 %v1964_v14, %v1810_v15 }
  0xb5   :  { %v733_v31 = vpop.f32.mrf.mxu0 }
  0xb6   :  { %v752_v33 = vpop.f32.mrf.mxu1  ;;  %v734_v19 = vadd.f32 %v733_v31, %v2216_v9 }
  0xb8   :  { %v753_v44 = vadd.f32 %v752_v33, %v734_v19  ;;  %v1971_v33 = vld [vmem:[#allocation9 + $0xe4] sm:$0xf0] }
  0xb9   :  { %v1833_v36 = vor.u32 %v1971_v33, %v1832_v29 }
  0xbb   :  { %1224 = vmatpush.bf16.msrb.mxu1 %v1833_v36  ;;  %v1794_v36 = vld [vmem:[#allocation9 + $0x98] sm:$0xf0] }
  0xbd   :  { %v771_v43 = vpop.f32.mrf.mxu2  ;;  %v735_v49 = vpop.f32.mrf.mxu0 }
  0xbe   :  { %v790_v47 = vpop.f32.mrf.mxu3  ;;  %v754_v55 = vpop.f32.mrf.mxu1  ;;  %v772_v24 = vadd.f32 %v771_v43, %v753_v44  ;;  %v736_v26 = vadd.f32 %v735_v49, %v2216_v9  ;;  %v1829_v43 = vor.u32 %v1968_v40, %v1826_v41  ;;  %v1809_v44 = vor.u32 %v1965_v18, %v1808_v16  ;;  %v1961_v40 = vld [vmem:[#allocation9 + $0x94] sm:$0xf0] }
  0xbf   :  { %1225 = vmatpush.bf16.msrb.mxu1 %v1825_v46  ;;  %v1958_v46 = vld [vmem:[#allocation9 + $0x84] sm:$0xf] }
  0xc0   :  { %v791_v61 = vadd.f32 %v790_v47, %v772_v24  ;;  %v755_v34 = vadd.f32 %v754_v55, %v736_v26  ;;  %v2231_v47 = vld [vmem:[#allocation7 + $0x1] ss:$4 sm:$0x3]  ;;  %1263 = vmatpush.bf16.msrb.mxu3 %v1829_v43  ;;  %v1802_v26 = vld [vmem:[#allocation9 + $0xa8] sm:$0xf0] }
  0xc3   :  { %1226 = vmatpush.bf16.msrb.mxu1 %v1817_v7 }
  0xc4   :  { %1264 = vmatpush.bf16.msrb.mxu3 %v1821_v4 }
  0xc5   :  { %v773_v6 = vpop.f32.mrf.mxu2  ;;  %v738_v11 = vpop.f32.mrf.mxu0 }
  0xc6   :  { %v792_v10 = vpop.f32.mrf.mxu3  ;;  %v757_v13 = vpop.f32.mrf.mxu1  ;;  %v774_v37 = vadd.f32 %v773_v6, %v755_v34  ;;  %v739_v38 = vadd.f32 %v738_v11, %v2216_v9 }
  0xc7   :  { %1227 = vmatpush.bf16.msrb.mxu1 %v1809_v44 }
  0xc8   :  { %v793_v52 = vadd.f32 %v792_v10, %v774_v37  ;;  %v758_v55 = vadd.f32 %v757_v13, %v739_v38  ;;  %v2240_v10 = vperm.slane %v2231_v47, 0  ;;  %1265 = vmatpush.bf16.msrb.mxu3 %v1813_v17  ;;  %v1792_v37 = vld [vmem:[#allocation9 + $0x90] sm:$0xf] }
  0xc9   :  { %v1793_v41 = vor.u32 %v1961_v40, %v1792_v37 }
  0xcd   :  { %v776_v21 = vpop.f32.mrf.mxu2  ;;  %v2221_v22 = vpop.f32.mrf.mxu0 }
  0xce   :  { %v2219_v50 = vpop.f32.mrf.mxu3  ;;  %v2223_v23 = vpop.f32.mrf.mxu1  ;;  %v777_v11 = vadd.f32 %v776_v21, %v758_v55  ;;  %v741_v19 = vadd.f32 %v2221_v22, %v2216_v9 }
  0xd0   :  { %v796_v21 = vadd.f32 %v2219_v50, %v777_v11  ;;  %v760_v29 = vadd.f32 %v2223_v23, %v741_v19 }
  0xd5   :  { %v2226_v27 = vpop.f32.mrf.mxu2  ;;  %v809_v30 = vpop.f32.mrf.mxu0 }
  0xd6   :  { %v2228_v51 = vpop.f32.mrf.mxu3  ;;  %v828_v31 = vpop.f32.mrf.mxu1  ;;  %v810_v35 = vadd.f32 %v809_v30, %v791_v61  ;;  %v1805_v61 = vor.u32 %v1962_v57, %v1802_v26  ;;  %v779_v33 = vadd.f32 %v2226_v27, %v760_v29  ;;  %v1786_v27 = vld [vmem:[#allocation9 + $0x88] sm:$0xf0] }
  0xd7   :  { %v1789_v63 = vor.u32 %v1958_v46, %v1786_v27 }
  0xd8   :  { %v829_v39 = vadd.f32 %v828_v31, %v810_v35  ;;  %v1801_v31 = vor.u32 %v1963_v28, %v1800_v56  ;;  %1266 = vmatpush.bf16.msrb.mxu3 %v1805_v61  ;;  %v1960_v35 = vld [vmem:[#allocation9 + $0x94] sm:$0xf]  ;;  %v798_v23 = vadd.f32 %v2228_v51, %v779_v33 }
  0xda   :  { %v960_v49 = vmul.f32 0.01, %v829_v39  ;;  %vm952_vm0 = vcmp.gt.f32.partialorder %v829_v39, 0.0  ;;  %1228 = vmatpush.bf16.msrb.mxu1 %v1801_v31 }
  0xdc   :  { %v968_v12 = vsel %vm952_vm0, %v829_v39, %v960_v49  ;;  %v1797_v39 = vor.u32 %v1960_v35, %v1794_v36  ;;  %v1784_v49 = vld [vmem:[#allocation9 + $0x80] sm:$0xf]  ;;  %v991_v36 = vperm.slane %v2237_v8, 1  ;;  %vm1324_vm0 = vcmask 7168  }
  0xdd   :  { %v2233_v58 = vpop.f32.mrf.mxu2  ;;  %v811_v1 = vpop.f32.mrf.mxu0  ;;  %v981_v24 = vmul.f32 %v2240_v10, %v968_v12 }
  0xde   :  { %v2235_v59 = vpop.f32.mrf.mxu3  ;;  %v830_v3 = vpop.f32.mrf.mxu1  ;;  %v812_v6 = vadd.f32 %v811_v1, %v793_v52  ;;  %1267 = vmatpush.bf16.msrb.mxu3 %v1797_v39  ;;  %1229 = vmatpush.bf16.msrb.mxu1 %v1793_v41  ;;  %v241_v52 = vperm.slane %v2213_v2, 1 }
  0xdf   :  { %v994_v50 = vadd.f32 %v2246_v48, %v981_v24 }
  0xe0   :  { %v831_v13 = vadd.f32 %v830_v3, %v812_v6  ;;  %v1785_v3 = vor.u32 %v1959_v0, %v1784_v49  ;;  %v848_v51 = vadd.f32 %v2233_v58, %v241_v52 }
  0xe2   :  { %vm954_vm1 = vcmp.gt.f32.partialorder %v831_v13, 0.0  ;;  %v962_v20 = vmul.f32 0.01, %v831_v13  ;;  %1268 = vmatpush.bf16.msrb.mxu3 %v1789_v63  ;;  %1230 = vmatpush.bf16.msrb.mxu1 %v1785_v3 }
  0xe4   :  { %v970_v53 = vsel %vm954_vm1, %v831_v13, %v962_v20  ;;  %v867_v13 = vadd.f32 %v2235_v59, %v848_v51 }
  0xe5   :  { %v2249_v25 = vpop.f32.mrf.mxu2  ;;  %v983_v9 = vmul.f32 %v2240_v10, %v970_v53  ;;  %v814_v22 = vpop.f32.mrf.mxu0 }
  0xe6   :  { %v2251_v54 = vpop.f32.mrf.mxu3  ;;  %v833_v60 = vpop.f32.mrf.mxu1  ;;  %v815_v30 = vadd.f32 %v814_v22, %v796_v21  ;;  %v850_v58 = vadd.f32 %v2249_v25, %v241_v52 }
  0xe7   :  { %v996_v32 = vadd.f32 %v2246_v48, %v983_v9 }
  0xe8   :  { %v834_v34 = vadd.f32 %v833_v60, %v815_v30  ;;  %v869_v53 = vadd.f32 %v2251_v54, %v850_v58  ;;  %v978_v30 = vperm.slane %v2231_v47, 1 }
  0xe9   :  { %v1002_v38 = vpack.c.bf16 %v996_v32, %v994_v50 }
  0xea   :  { %v964_v42 = vmul.f32 0.01, %v834_v34  ;;  %vm956_vm2 = vcmp.gt.f32.partialorder %v834_v34, 0.0 }
  0xeb   :  { %1212 = vmatmul.bf16.vlgmr.msrb.gmra.mxu0 %v1002_v38  ;;  %1250 = vmatmul.bf16.vlgmr.msrb.gmra.mxu2 %v1002_v38 }
  0xec   :  { %v972_v4 = vsel %vm956_vm2, %v834_v34, %v964_v42 }
  0xed   :  { %v852_v43 = vpop.f32.mrf.mxu2  ;;  %v816_v55 = vpop.f32.mrf.mxu0  ;;  %v985_v7 = vmul.f32 %v2240_v10, %v972_v4 }
  0xee   :  { %v871_v45 = vpop.f32.mrf.mxu3  ;;  %v835_v62 = vpop.f32.mrf.mxu1  ;;  %v817_v1 = vadd.f32 %v816_v55, %v798_v23  ;;  %v853_v22 = vadd.f32 %v852_v43, %v241_v52 }
  0xef   :  { %v998_v18 = vadd.f32 %v2246_v48, %v985_v7 }
  0xf0   :  { %v836_v5 = vadd.f32 %v835_v62, %v817_v1  ;;  %v872_v25 = vadd.f32 %v871_v45, %v853_v22 }
  0xf2   :  { %vm958_vm3 = vcmp.gt.f32.partialorder %v836_v5, 0.0  ;;  %v966_v6 = vmul.f32 0.01, %v836_v5 }
  0xf4   :  { %v974_v11 = vsel %vm958_vm3, %v836_v5, %v966_v6 }
  0xf5   :  { %v854_v12 = vpop.f32.mrf.mxu2  ;;  %v885_v14 = vpop.f32.mrf.mxu0  ;;  %v987_v16 = vmul.f32 %v2240_v10, %v974_v11 }
  0xf6   :  { %v873_v2 = vpop.f32.mrf.mxu3  ;;  %v904_v15 = vpop.f32.mrf.mxu1  ;;  %v886_v17 = vadd.f32 %v885_v14, %v867_v13  ;;  %v855_v33 = vadd.f32 %v854_v12, %v241_v52 }
  0xf7   :  { %v1000_v19 = vadd.f32 %v2246_v48, %v987_v16 }
  0xf8   :  { %v905_v44 = vadd.f32 %v904_v15, %v886_v17  ;;  %v874_v42 = vadd.f32 %v873_v2, %v855_v33 }
  0xf9   :  { %v1004_v20 = vpack.c.bf16 %v1000_v19, %v998_v18  ;;  %v1038_v18 = vld [vmem:[%s2287_s5] sm:$0x3] }
  0xfa   :  { %v1040_v58 = vperm.slane %v1038_v18, 0 }
  0xfb   :  { %1217 = vmatmul.bf16.gmra.mxu0 %v1004_v20  ;;  %1255 = vmatmul.bf16.gmra.mxu2 %v1004_v20 }
  0xfd   :  { %v923_v24 = vpop.f32.mrf.mxu2  ;;  %v887_v57 = vpop.f32.mrf.mxu0 }
  0xfe   :  { %v942_v21 = vpop.f32.mrf.mxu3  ;;  %v924_v59 = vadd.f32 %v923_v24, %v905_v44  ;;  %v906_v26 = vpop.f32.mrf.mxu1  ;;  %v888_v10 = vadd.f32 %v887_v57, %v869_v53  ;;  %v1041_v44 = vperm.slane %v1038_v18, 1 }
 0x100   :  { %v943_v9 = vadd.f32 %v942_v21, %v924_v59  ;;  %v907_v61 = vadd.f32 %v906_v26, %v888_v10 }
 0x102   :  { %v961_v60 = vmul.f32 0.01, %v943_v9  ;;  %vm953_vm4 = vcmp.gt.f32.partialorder %v943_v9, 0.0 }
 0x104   :  { %v969_v31 = vsel %vm953_vm4, %v943_v9, %v961_v60 }
 0x105   :  { %v925_v48 = vpop.f32.mrf.mxu2  ;;  %v890_v29 = vpop.f32.mrf.mxu0  ;;  %v982_v35 = vmul.f32 %v978_v30, %v969_v31 }
 0x106   :  { %v944_v56 = vpop.f32.mrf.mxu3  ;;  %v926_v28 = vadd.f32 %v925_v48, %v907_v61  ;;  %v891_v32 = vadd.f32 %v890_v29, %v872_v25  ;;  %v909_v54 = vpop.f32.mrf.mxu1 }
 0x107   :  { %v995_v45 = vadd.f32 %v991_v36, %v982_v35 }
 0x108   :  { %v945_v50 = vadd.f32 %v944_v56, %v926_v28  ;;  %v910_v38 = vadd.f32 %v909_v54, %v891_v32  ;;  %v1308_v32 = vld [vmem:[%s2288_s6] sm:$0x3] }
 0x10a   :  { %vm955_vm5 = vcmp.gt.f32.partialorder %v945_v50, 0.0  ;;  %v963_v34 = vmul.f32 0.01, %v945_v50 }
 0x10c   :  { %v971_v37 = vsel %vm955_vm5, %v945_v50, %v963_v34 }
 0x10d   :  { %v984_v39 = vmul.f32 %v978_v30, %v971_v37  ;;  %v928_v40 = vpop.f32.mrf.mxu2  ;;  %v892_v43 = vpop.f32.mrf.mxu0 }
 0x10e   :  { %v947_v41 = vpop.f32.mrf.mxu3  ;;  %v929_v23 = vadd.f32 %v928_v40, %v910_v38  ;;  %v893_v27 = vadd.f32 %v892_v43, %v874_v42  ;;  %v911_v55 = vpop.f32.mrf.mxu1  ;;  %v1310_v40 = vperm.slane %v1308_v32, 0 }
 0x10f   :  { %v997_v47 = vadd.f32 %v991_v36, %v984_v39 }
 0x110   :  { %v948_v46 = vadd.f32 %v947_v41, %v929_v23  ;;  %v912_v62 = vadd.f32 %v911_v55, %v893_v27  ;;  %v1311_v41 = vperm.slane %v1308_v32, 1 }
 0x111   :  { %v1003_v49 = vpack.c.bf16 %v997_v47, %v995_v45 }
 0x112   :  { %v965_v52 = vmul.f32 0.01, %v948_v46  ;;  %vm957_vm6 = vcmp.gt.f32.partialorder %v948_v46, 0.0 }
 0x113   :  { %1231 = vmatmul.bf16.vlgmr.msrb.gmra.mxu1 %v1003_v49  ;;  %1269 = vmatmul.bf16.vlgmr.msrb.gmra.mxu3 %v1003_v49 }
 0x114   :  { %v973_v1 = vsel %vm957_vm6, %v948_v46, %v965_v52 }
 0x115   :  { %v930_v8 = vpop.f32.mrf.mxu2  ;;  %v986_v5 = vmul.f32 %v978_v30, %v973_v1 }
 0x116   :  { %v931_v63 = vadd.f32 %v930_v8, %v912_v62  ;;  %v949_v0 = vpop.f32.mrf.mxu3 }
 0x117   :  { %v999_v7 = vadd.f32 %v991_v36, %v986_v5 }
 0x118   :  { %v950_v3 = vadd.f32 %v949_v0, %v931_v63 }
 0x11a   :  { %vm959_vm7 = vcmp.gt.f32.partialorder %v950_v3, 0.0  ;;  %v967_v4 = vmul.f32 0.01, %v950_v3 }
 0x11c   :  { %v975_v51 = vsel %vm959_vm7, %v950_v3, %v967_v4 }
 0x11d   :  { %v988_v6 = vmul.f32 %v978_v30, %v975_v51 }
 0x11f   :  { %v1001_v11 = vadd.f32 %v991_v36, %v988_v6 }
 0x121   :  { %v1005_v12 = vpack.c.bf16 %v1001_v11, %v999_v7 }
 0x123   :  { %1236 = vmatmul.bf16.gmra.mxu1 %v1005_v12  ;;  %1274 = vmatmul.bf16.gmra.mxu3 %v1005_v12 }
 0x168   :  { %v1213_v2 = vpop.f32.mrf.mxu0 }
 0x169   :  { %v1214_v24 = vadd.f32 %v1213_v2, %v1040_v58 }
 0x16e   :  { %v1251_v13 = vpop.f32.mrf.mxu2 }
 0x16f   :  { %v1252_v9 = vadd.f32 %v1251_v13, %v1041_v44 }
 0x170   :  { %v1215_v14 = vpop.f32.mrf.mxu0 }
 0x171   :  { %v1216_v25 = vadd.f32 %v1215_v14, %v1040_v58 }
 0x176   :  { %v1253_v16 = vpop.f32.mrf.mxu2 }
 0x177   :  { %v1254_v54 = vadd.f32 %v1253_v16, %v1041_v44 }
 0x178   :  { %v1218_v20 = vpop.f32.mrf.mxu0 }
 0x179   :  { %v1219_v53 = vadd.f32 %v1218_v20, %v1040_v58 }
 0x17e   :  { %v1256_v59 = vpop.f32.mrf.mxu2 }
 0x17f   :  { %v1257_v56 = vadd.f32 %v1256_v59, %v1041_v44 }
 0x180   :  { %v1220_v61 = vpop.f32.mrf.mxu0 }
 0x181   :  { %v1221_v29 = vadd.f32 %v1220_v61, %v1040_v58 }
 0x186   :  { %v1258_v38 = vpop.f32.mrf.mxu2 }
 0x187   :  { %v1259_v46 = vadd.f32 %v1258_v38, %v1041_v44 }
 0x190   :  { %v1232_v15 = vpop.f32.mrf.mxu1 }
 0x191   :  { %v1233_v57 = vadd.f32 %v1232_v15, %v1214_v24 }
 0x193   :  { %v1288_v48 = vmul.f32 0.01, %v1233_v57  ;;  %vm1280_vm9 = vcmp.gt.f32.partialorder %v1233_v57, 0.0 }
 0x195   :  { %v1296_v34 = vsel %vm1280_vm9, %v1233_v57, %v1288_v48 }
 0x196   :  { %v1270_v17 = vpop.f32.mrf.mxu3 }
 0x197   :  { %v1271_v22 = vadd.f32 %v1270_v17, %v1252_v9 }
 0x198   :  { %v1234_v19 = vpop.f32.mrf.mxu1 }
 0x199   :  { %v1289_v30 = vmul.f32 0.01, %v1271_v22  ;;  %vm1281_vm10 = vcmp.gt.f32.partialorder %v1271_v22, 0.0  ;;  %v1235_v35 = vadd.f32 %v1234_v19, %v1216_v25 }
 0x19b   :  { %v1297_v43 = vsel %vm1281_vm10, %v1271_v22, %v1289_v30  ;;  %v1290_v27 = vmul.f32 0.01, %v1235_v35  ;;  %vm1282_vm13 = vcmp.gt.f32.partialorder %v1235_v35, 0.0 }
 0x19d   :  { %v1298_v1 = vsel %vm1282_vm13, %v1235_v35, %v1290_v27 }
 0x19e   :  { %v1272_v21 = vpop.f32.mrf.mxu3 }
 0x19f   :  { %v1273_v42 = vadd.f32 %v1272_v21, %v1254_v54 }
 0x1a0   :  { %v1237_v26 = vpop.f32.mrf.mxu1 }
 0x1a1   :  { %v1238_v10 = vadd.f32 %v1237_v26, %v1219_v53  ;;  %v1291_v62 = vmul.f32 0.01, %v1273_v42  ;;  %vm1283_vm14 = vcmp.gt.f32.partialorder %v1273_v42, 0.0 }
 0x1a3   :  { %v1292_v60 = vmul.f32 0.01, %v1238_v10  ;;  %vm1284_vm8 = vcmp.gt.f32.partialorder %v1238_v10, 0.0  ;;  %v1299_v5 = vsel %vm1283_vm14, %v1273_v42, %v1291_v62 }
 0x1a5   :  { %v1300_v50 = vsel %vm1284_vm8, %v1238_v10, %v1292_v60 }
 0x1a6   :  { %v1275_v28 = vpop.f32.mrf.mxu3  ;;  %v1304_v39 = vsub.f32 %v1296_v34, %v1300_v50 }
 0x1a7   :  { %v1276_v31 = vadd.f32 %v1275_v28, %v1257_v56 }
 0x1a8   :  { %v1239_v33 = vpop.f32.mrf.mxu1  ;;  %v1314_v55 = vmul.f32 %v1310_v40, %v1304_v39 }
 0x1a9   :  { %vm1285_vm11 = vcmp.gt.f32.partialorder %v1276_v31, 0.0  ;;  %v1293_v36 = vmul.f32 0.01, %v1276_v31  ;;  %v1240_v37 = vadd.f32 %v1239_v33, %v1221_v29 }
 0x1ab   :  { %v1294_v23 = vmul.f32 0.01, %v1240_v37  ;;  %v1301_v45 = vsel %vm1285_vm11, %v1276_v31, %v1293_v36  ;;  %vm1286_vm12 = vcmp.gt.f32.partialorder %v1240_v37, 0.0 }
 0x1ac   :  { %v1305_v47 = vsub.f32 %v1297_v43, %v1301_v45 }
 0x1ad   :  { %v1302_v8 = vsel %vm1286_vm12, %v1240_v37, %v1294_v23 }
 0x1ae   :  { %v1277_v49 = vpop.f32.mrf.mxu3  ;;  %v1315_v52 = vmul.f32 %v1311_v41, %v1305_v47  ;;  %v1306_v4 = vsub.f32 %v1298_v1, %v1302_v8 }
 0x1af   :  { %v1278_v63 = vadd.f32 %v1277_v49, %v1259_v46 }
 0x1b0   :  { %v1318_v0 = vadd.f32 %v1315_v52, %v1314_v55  ;;  %v1316_v7 = vmul.f32 %v1310_v40, %v1306_v4 }
 0x1b1   :  { %vm1287_vm15 = vcmp.gt.f32.partialorder %v1278_v63, 0.0  ;;  %v1295_v3 = vmul.f32 0.01, %v1278_v63 }
 0x1b2   :  { %1319 = vadd.xlane.f32.xlu0 %v1318_v0 }
 0x1b3   :  { %v1303_v51 = vsel %vm1287_vm15, %v1278_v63, %v1295_v3 }
 0x1b4   :  { %v1307_v6 = vsub.f32 %v1299_v5, %v1303_v51 }
 0x1b6   :  { %v1317_v11 = vmul.f32 %v1311_v41, %v1307_v6 }
 0x1b8   :  { %v1321_v12 = vadd.f32 %v1317_v11, %v1316_v7 }
 0x1ba   :  { %1322 = vadd.xlane.f32.xlu0 %v1321_v12 }
 0x225   :  { %v1320_v2 = vpop.xlane.xlu0 %1319 }
 0x226   :  { %1325 = vst.msk [vmem:[%s2289_s7] sm:$0xff] %vm1324_vm0, %v1320_v2 }
 0x22d   :  { %v1323_v13 = vpop.xlane.xlu0 %1322 }
 0x22e   :  { %1326 = vst.msk [vmem:[%s2289_s7 + $0x8] sm:$0xff] %vm1324_vm0, %v1323_v13 }
 0x22f   :  { %1331 = vsyncpa [#allocation3], 1 }
 0x230   :  { %1332 = vsyncpa [#allocation5], 1 }
 0x231   :  { %1333 = vsyncpa [#allocation8], 1 }

</bundles_post_ra>
